<compile_context>
chip_gen: v5e
topology: v5e:2x2
jax: 0.10.0
libtpu: 0.0.40
codegen_flags: <defaults>
</compile_context>

<pallas_src>
import numpy as np
import jax
import jax.numpy as jnp
from jax import lax
from jax.experimental import pallas as pl
from jax.experimental.pallas import tpu as pltpu

LANE = 128      # lane width: last-dim tiles are multiples of 128 (lane-dense stores)
SUB = 8         # sublane rows used for the LHS (signal sits in row 0, rest zero)
SQRT2PI = float(np.sqrt(2.0 * np.pi))


def get_padding(n: int):
    nk = n - (1 - n % 2)
    pad = (nk - 1) // 2
    return nk, pad


def _round_up(x: int, m: int) -> int:
    return ((x + m - 1) // m) * m


def make_gauss_conv(T: int, dot_dtype=jnp.float32):
    """Builds the forward fn for signal length T.

    dot_dtype=jnp.float32  -> fp32 MXU contraction (precision=HIGHEST), matches the
                              PyTorch module numerics (default).
    dot_dtype=jnp.bfloat16 -> bf16 MXU inputs + f32 accumulation, the recommended
                              high-throughput mode on v6e/v7x (bf16-native MXU).
    """
    _nk, PAD = get_padding(T)
    T_pad = _round_up(T, LANE)

    # Largest lane-dense tile (<= 512) that divides the padded length.
    tile = 128
    for cand in (512, 256, 128):
        if T_pad % cand == 0:
            tile = cand
            break
    TN = TK = tile
    n_j = T_pad // TN          # output-column tiles  ("parallel")
    n_k = T_pad // TK          # contraction tiles    ("arbitrary", innermost)

    use_f32_dot = (dot_dtype == jnp.float32)

    def kernel(sigma_ref, mu_ref, x_ref, o_ref, acc_ref):
        j = pl.program_id(0)                 # output-column tile
        k = pl.program_id(1)                 # contraction (input-column) tile

        @pl.when(k == 0)
        def _init():
            acc_ref[...] = jnp.zeros_like(acc_ref)

        t_lo = j * TN
        s_lo = k * TK
        # Banded structure: output columns [t_lo, t_lo+TN) only receive
        # contributions from rows s with |t - s| <= PAD.  Skip dead tiles.
        intersects = jnp.logical_and(
            s_lo <= t_lo + (TN - 1) + PAD,
            s_lo + (TK - 1) >= t_lo - PAD,
        )

        @pl.when(intersects)
        def _compute():
            sigma = sigma_ref[0]
            mu = mu_ref[0]
            # Scalar strength reduction: two scalar divides once per tile, the
            # (TK, TN) tensor only sees multiplies.
            inv_2s2 = 0.5 / (sigma * sigma)
            inv_norm = 1.0 / (sigma * SQRT2PI)

            # Analytic Gaussian band-matrix tile W[s_local, t_local].
            s_idx = lax.broadcasted_iota(jnp.int32, (TK, TN), 0) + s_lo
            t_idx = lax.broadcasted_iota(jnp.int32, (TK, TN), 1) + t_lo
            d = t_idx - s_idx                                  # exact int32
            arg = d.astype(jnp.float32) - (0.5 + mu)
            w = jnp.exp(-(arg * arg) * inv_2s2) * inv_norm
            # Truncated support + signal boundaries (zero outside the band).
            w = jnp.where(jnp.abs(d) <= PAD, w, 0.0)

            if use_f32_dot:
                # fp32 contraction on the MXU (multi-pass) to keep f32 accuracy.
                part = jnp.dot(
                    x_ref[...], w,
                    preferred_element_type=jnp.float32,
                    precision=lax.Precision.HIGHEST)
            else:
                # bf16 MXU inputs, f32 accumulation (v6e/v7x fast path; elementwise
                # generation above stays f32, which also suits v5e's f32-only VPU/EUP).
                part = jnp.dot(
                    x_ref[...].astype(jnp.bfloat16),
                    w.astype(jnp.bfloat16),
                    preferred_element_type=jnp.float32)
            acc_ref[...] += part

        @pl.when(k == pl.num_programs(1) - 1)
        def _finalize():
            o_ref[...] = acc_ref[...]

    grid_spec = pltpu.PrefetchScalarGridSpec(
        num_scalar_prefetch=0,
        grid=(n_j, n_k),
        in_specs=[
            pl.BlockSpec(memory_space=pltpu.MemorySpace.SMEM),      # sigma (1,)
            pl.BlockSpec(memory_space=pltpu.MemorySpace.SMEM),      # mu    (1,)
            pl.BlockSpec((SUB, TK), lambda j, k: (0, k)),           # x tile
        ],
        out_specs=pl.BlockSpec((SUB, TN), lambda j, k: (0, j)),     # lane-dense output tile
        scratch_shapes=[pltpu.VMEM((SUB, TN), jnp.float32)],        # f32 accumulator
    )

    call = pl.pallas_call(
        kernel,
        out_shape=jax.ShapeDtypeStruct((SUB, T_pad), jnp.float32),
        grid_spec=grid_spec,
        compiler_params=pltpu.CompilerParams(
            dimension_semantics=("parallel", "arbitrary"),  # v7x: shard j over 2 TCs
            vmem_limit_bytes=32 * 1024 * 1024,
        ),
    )

    def fwd(x, sigma, mu):
        assert x.shape == (1, T)
        x = x.astype(jnp.float32)
        # Only lane/sublane alignment padding remains (< 128 cols, 7 zero rows);
        # the old (nk-1)-wide halo zero-pad is gone (band mask handles boundaries).
        # TODO(synk): real batches (>1 signals) should fill the SUB rows instead of zeros.
        xp = jnp.pad(x, ((0, SUB - 1), (0, T_pad - T)))
        out = call(sigma, mu, xp)
        return out[0:1, :T]

    return fwd


def _numpy_reference(x, sigma, mu):
    """float64 mirror of the PyTorch forward."""
    T = x.shape[1]
    nk, pad = get_padding(T)
    xs = np.asarray(x)[0].astype(np.float64)
    support = np.arange(-nk / 2, nk / 2, 1.0, dtype=np.float64)
    base = np.exp(-np.square(support - mu) / (2.0 * sigma * sigma))
    kern_flipped = (base / (sigma * np.sqrt(2.0 * np.pi)))[::-1]
    xpad = np.pad(xs, (pad, pad))
    return np.array([np.dot(xpad[t:t + nk], kern_flipped) for t in range(T)])


if __name__ == "__main__":
    key = jax.random.PRNGKey(0)

    # (T, sigma, mu): the module's init (sigma=1, mu=0) plus one non-trivial setting.
    cases = [(16, 1.0, 0.0), (384, 1.0, 0.0), (384, 1.5, 0.25)]

    for T, sig_v, mu_v in cases:
        key, kx = jax.random.split(key)
        x = jax.random.normal(kx, (1, T), dtype=jnp.float32)
        sigma = jnp.full((1,), sig_v, dtype=jnp.float32)
        mu = jnp.full((1,), mu_v, dtype=jnp.float32)
        ref = _numpy_reference(x, sig_v, mu_v)

        # Default fp32-precision MXU path: faithful to the PyTorch module.
        out32 = jax.block_until_ready(make_gauss_conv(T, jnp.float32)(x, sigma, mu))
        assert out32.shape == (1, T)
        assert np.allclose(np.asarray(out32)[0], ref, rtol=1e-4, atol=1e-5), \
            f"f32 path mismatch (T={T}, sigma={sig_v}, mu={mu_v})"

        # bf16-input MXU path (recommended on v6e/v7x); tolerance reflects bf16
        # input rounding (~2^-9 relative), accumulation stays f32.
        out16 = jax.block_until_ready(make_gauss_conv(T, jnp.bfloat16)(x, sigma, mu))
        assert np.allclose(np.asarray(out16)[0], ref, rtol=2e-2, atol=2e-2), \
            f"bf16 path mismatch (T={T}, sigma={sig_v}, mu={mu_v})"

    print("KERNEL_OK")
</pallas_src>

<mosaic_0001>
module attributes {stable_mosaic.version = 11 : i64} {
  func.func @kernel(%arg0: i32, %arg1: i32, %arg2: memref<1xf32, #tpu.memory_space<smem>>, %arg3: memref<1xf32, #tpu.memory_space<smem>>, %arg4: memref<8x128xf32, #tpu.memory_space<vmem>>, %arg5: memref<8x128xf32, #tpu.memory_space<vmem>>, %arg6: memref<8x128xf32, #tpu.memory_space<vmem>>) attributes {dimension_semantics = [#tpu.dimension_semantics<parallel>, #tpu.dimension_semantics<arbitrary>], iteration_bounds = array<i64: 1, 1>, scalar_prefetch = 0 : i64, scratch_operands = 1 : i64, tpu.core_type = #tpu.core_type<tc>, window_params = [{transform_indices = @transform_0, window_bounds = array<i64: 1>}, {transform_indices = @transform_1, window_bounds = array<i64: 1>}, {transform_indices = @transform_2, window_bounds = array<i64: 8, 128>}, {transform_indices = @transform_3, window_bounds = array<i64: 8, 128>}]} {
    %c0_i32 = arith.constant 0 : i32
    %0 = arith.cmpi eq, %arg1, %c0_i32 : i32
    %1 = arith.extui %0 : i1 to i32
    %c0_i32_0 = arith.constant 0 : i32
    %2 = arith.cmpi ne, %1, %c0_i32_0 : i32
    scf.if %2 {
      %cst = arith.constant 0.000000e+00 : f32
      %17 = vector.broadcast %cst : f32 to vector<8x128xf32>
      %c0 = arith.constant 0 : index
      %c0_7 = arith.constant 0 : index
      %18 = vector.load %arg6[%c0, %c0_7] : memref<8x128xf32, #tpu.memory_space<vmem>>, vector<8x128xf32>
      tpu.vector_store %arg6[%c0, %c0_7], %17 {strides = array<i32>} : memref<8x128xf32, #tpu.memory_space<vmem>>, vector<8x128xf32>,
    } else {
    }
    %c128_i32 = arith.constant 128 : i32
    %3 = arith.muli %arg0, %c128_i32 : i32
    %c128_i32_1 = arith.constant 128 : i32
    %4 = arith.muli %arg1, %c128_i32_1 : i32
    %c127_i32 = arith.constant 127 : i32
    %5 = arith.addi %3, %c127_i32 : i32
    %c7_i32 = arith.constant 7 : i32
    %6 = arith.addi %5, %c7_i32 : i32
    %7 = arith.cmpi sle, %4, %6 : i32
    %c127_i32_2 = arith.constant 127 : i32
    %8 = arith.addi %4, %c127_i32_2 : i32
    %c7_i32_3 = arith.constant 7 : i32
    %9 = arith.subi %3, %c7_i32_3 : i32
    %10 = arith.cmpi sge, %8, %9 : i32
    %11 = arith.andi %7, %10 : i1
    %12 = arith.extui %11 : i1 to i32
    %c0_i32_4 = arith.constant 0 : i32
    %13 = arith.cmpi ne, %12, %c0_i32_4 : i32
    scf.if %13 {
      %c0 = arith.constant 0 : index
      %17 = memref.load %arg2[%c0] : memref<1xf32, #tpu.memory_space<smem>>
      %c0_7 = arith.constant 0 : index
      %18 = memref.load %arg3[%c0_7] : memref<1xf32, #tpu.memory_space<smem>>
      %19 = arith.mulf %17, %17 : f32
      %cst = arith.constant 5.000000e-01 : f32
      %20 = arith.divf %cst, %19 : f32
      %cst_8 = arith.constant 2.50662827 : f32
      %21 = arith.mulf %17, %cst_8 : f32
      %cst_9 = arith.constant 1.000000e+00 : f32
      %22 = arith.divf %cst_9, %21 : f32
      %23 = tpu.iota {dimensions = array<i32: 0>} : vector<128x128xi32>
      %24 = vector.broadcast %4 : i32 to vector<128x128xi32>
      %25 = arith.addi %23, %24 : vector<128x128xi32>
      %26 = tpu.iota {dimensions = array<i32: 1>} : vector<128x128xi32>
      %27 = vector.broadcast %3 : i32 to vector<128x128xi32>
      %28 = arith.addi %26, %27 : vector<128x128xi32>
      %29 = arith.subi %28, %25 : vector<128x128xi32>
      %30 = arith.sitofp %29 : vector<128x128xi32> to vector<128x128xf32>
      %cst_10 = arith.constant 5.000000e-01 : f32
      %31 = arith.addf %cst_10, %18 : f32
      %32 = vector.broadcast %31 : f32 to vector<128x128xf32>
      %33 = arith.subf %30, %32 : vector<128x128xf32>
      %34 = arith.mulf %33, %33 : vector<128x128xf32>
      %cst_11 = arith.constant 0.000000e+00 : f32
      %35 = vector.broadcast %cst_11 : f32 to vector<128x128xf32>
      %36 = arith.subf %35, %34 : vector<128x128xf32>
      %37 = vector.broadcast %20 : f32 to vector<128x128xf32>
      %38 = arith.mulf %36, %37 : vector<128x128xf32>
      %39 = math.exp %38 : vector<128x128xf32>
      %40 = vector.broadcast %22 : f32 to vector<128x128xf32>
      %41 = arith.mulf %39, %40 : vector<128x128xf32>
      %42 = math.absi %29 : vector<128x128xi32>
      %c7_i32_12 = arith.constant 7 : i32
      %43 = vector.broadcast %c7_i32_12 : i32 to vector<128x128xi32>
      %44 = arith.cmpi sle, %42, %43 : vector<128x128xi32>
      %cst_13 = arith.constant 0.000000e+00 : f32
      %45 = vector.broadcast %cst_13 : f32 to vector<128x128xf32>
      %46 = arith.select %44, %41, %45 : vector<128x128xi1>, vector<128x128xf32>
      %c0_14 = arith.constant 0 : index
      %c0_15 = arith.constant 0 : index
      %47 = vector.load %arg4[%c0_14, %c0_15] : memref<8x128xf32, #tpu.memory_space<vmem>>, vector<8x128xf32>
      %cst_16 = arith.constant dense<0.000000e+00> : vector<8x128xf32>
      %48 = tpu.matmul %47, %46, %cst_16 {dimension_numbers = #tpu.dot_dimension_numbers<[1], [0], [0], [1], [0, 0, 1, 1], [], []>, precision = #tpu.contract_precision<fp32>} : vector<8x128xf32>, vector<128x128xf32>, vector<8x128xf32> -> vector<8x128xf32>
      %c0_17 = arith.constant 0 : index
      %c0_18 = arith.constant 0 : index
      %49 = vector.load %arg6[%c0_17, %c0_18] : memref<8x128xf32, #tpu.memory_space<vmem>>, vector<8x128xf32>
      %50 = arith.addf %49, %48 : vector<8x128xf32>
      %c0_19 = arith.constant 0 : index
      %c0_20 = arith.constant 0 : index
      %51 = vector.load %arg6[%c0_19, %c0_20] : memref<8x128xf32, #tpu.memory_space<vmem>>, vector<8x128xf32>
      tpu.vector_store %arg6[%c0_19, %c0_20], %50 {strides = array<i32>} : memref<8x128xf32, #tpu.memory_space<vmem>>, vector<8x128xf32>,
    } else {
    }
    %c0_i32_5 = arith.constant 0 : i32
    %14 = arith.cmpi eq, %arg1, %c0_i32_5 : i32
    %15 = arith.extui %14 : i1 to i32
    %c0_i32_6 = arith.constant 0 : i32
    %16 = arith.cmpi ne, %15, %c0_i32_6 : i32
    scf.if %16 {
      %c0 = arith.constant 0 : index
      %c0_7 = arith.constant 0 : index
      %17 = vector.load %arg6[%c0, %c0_7] : memref<8x128xf32, #tpu.memory_space<vmem>>, vector<8x128xf32>
      %c0_8 = arith.constant 0 : index
      %c0_9 = arith.constant 0 : index
      %18 = vector.load %arg5[%c0_8, %c0_9] : memref<8x128xf32, #tpu.memory_space<vmem>>, vector<8x128xf32>
      tpu.vector_store %arg5[%c0_8, %c0_9], %17 {strides = array<i32>} : memref<8x128xf32, #tpu.memory_space<vmem>>, vector<8x128xf32>,
    } else {
    }
    return
  }
  func.func @transform_0(%arg0: i32, %arg1: i32) -> i32 {
    %c0_i32 = arith.constant 0 : i32
    %c0_i32_0 = arith.constant 0 : i32
    return %c0_i32 : i32
  }
  func.func @transform_1(%arg0: i32, %arg1: i32) -> i32 {
    %c0_i32 = arith.constant 0 : i32
    %c0_i32_0 = arith.constant 0 : i32
    return %c0_i32 : i32
  }
  func.func @transform_2(%arg0: i32, %arg1: i32) -> (i32, i32) {
    %c0_i32 = arith.constant 0 : i32
    %c0_i32_0 = arith.constant 0 : i32
    return %c0_i32, %arg1 : i32, i32
  }
  func.func @transform_3(%arg0: i32, %arg1: i32) -> (i32, i32) {
    %c0_i32 = arith.constant 0 : i32
    %c0_i32_0 = arith.constant 0 : i32
    return %c0_i32, %arg0 : i32, i32
  }
}

</mosaic_0001>

<bundles_post_ra>
// kernel: tpu_custom_call.1
= control target key start
LH: loop header
LB: loop body
LE: loop exit
PB: predicated region body
PF: predicated region fallthrough
CT: control target
= control target key end

     0   :  { %10 = vsyncpa [#allocation6], 0  ;;  %s1407_s0 = inlined_call_operand.<no memory space> [shape: f32[1], index: 0, kind: input, shape index: {}]   ;;  %s1408_s1 = inlined_call_operand.<no memory space> [shape: f32[1], index: 1, kind: input, shape index: {}]   ;;  %s1409_s2 = inlined_call_operand.hbm [shape: f32[8,128], index: 2, kind: input, shape index: {}]   ;;  %s1410_s3 = inlined_call_operand.hbm [shape: f32[8,128], index: 3, kind: output, shape index: {}]  }
   0x1   :  { %11 = vsyncpa [#allocation7], 0  ;;  %s21_s14 = sshll.u32 %s1409_s2, 4  ;;  %s811_s15 = smov [#allocation5]   ;;  %s22_s14 = int_to_ptr.hbm [resolvable:$true] %s21_s14 }
   0x2   :  { %s23_s16 = sshll.u32 %s811_s15, 4  ;;  %s49_s19 = smul.f32 %s1407_s0, %s1407_s0  ;;  %s24_s16 = int_to_ptr.vmem [resolvable:$true] %s23_s16 }
   0x3   :  { %26 = dma.hbm_to_vmem [thread:$0]  %s22_s14, 128, %s24_s16, [#allocation6]  }
   0x4   :  { %807 = dma.done.wait [#allocation6], 128  }
   0x5   :  { %808 = vsyncadd [#allocation6], 4294967168  ;;  %s67_s22 = smul.f32 2.5066283, %s1407_s0  ;;  %v50_v0 = vstv %s49_s19  ;;  %v84_v22 = vlaneseq  ;;  %s154_s23 = sadd.f32 0.5, %s1408_s1 }
   0x6   :  { %723 = vrcp.f32 %v50_v0  ;;  %vm56_vm0 = vweird.f32 %v50_v0  ;;  %v62_v5 = vand.u32 2147483648, %v50_v0  ;;  %v60_v7 = vand.u32 2147483647, %v50_v0  ;;  %s812_s26 = smov [#allocation8]   ;;  %s707_s30 = sshll.u32 %s1410_s3, 4  ;;  %s708_s30 = int_to_ptr.hbm [resolvable:$true] %s707_s30 }
   0x7   :  { %v68_v1 = vstv %s67_s22  ;;  %v843_v23 = vshrl.u32 %v84_v22, 7  ;;  %v846_v25 = vand.u32 127, %v84_v22  ;;  %v880_v43 = vstv %s154_s23  ;;  %s705_s27 = sshll.u32 %s812_s26, 4  ;;  %s706_s27 = int_to_ptr.vmem [resolvable:$true] %s705_s27 }
   0x8   :  { %725 = vrcp.f32 %v68_v1  ;;  %vm74_vm2 = vweird.f32 %v68_v1  ;;  %v80_v9 = vand.u32 2147483648, %v68_v1  ;;  %v78_v12 = vand.u32 2147483647, %v68_v1 }
   0x9   :  { %v63_v13 = vor.u32 1.1754944e-38, %v62_v5  ;;  %vm61_vm5 = vcmp.eq.f32.partialorder %v60_v7, 8.507059e+37  ;;  %v100_v24 = vadd.s32 120, %v843_v23  ;;  %v99_v26 = vadd.s32 112, %v843_v23 }
   0xa   :  { %v81_v16 = vor.u32 1.1754944e-38, %v80_v9  ;;  %vm79_vm7 = vcmp.eq.f32.partialorder %v78_v12, 8.507059e+37  ;;  %v98_v27 = vadd.s32 104, %v843_v23  ;;  %v97_v28 = vadd.s32 96, %v843_v23 }
   0xb   :  { %v96_v29 = vadd.s32 88, %v843_v23  ;;  %v95_v30 = vadd.s32 80, %v843_v23  ;;  %v854_v31 = vsub.s32 %v846_v25, %v100_v24  ;;  %v860_v32 = vsub.s32 %v846_v25, %v99_v26 }
   0xc   :  { %v724_v2 = vpop.eup %723  ;;  %v94_v33 = vadd.s32 72, %v843_v23  ;;  %v864_v34 = vsub.s32 %v846_v25, %v98_v27  ;;  %v867_v35 = vsub.s32 %v846_v25, %v97_v28  ;;  %v93_v37 = vadd.s32 64, %v843_v23 }
   0xd   :  { %v52_v3 = vmul.f32 %v724_v2, %v50_v0  ;;  %vm57_vm1 = vweird.f32 %v724_v2  ;;  %v870_v36 = vsub.s32 %v846_v25, %v96_v29  ;;  %v874_v38 = vsub.s32 %v846_v25, %v95_v30 }
   0xe   :  { %v726_v4 = vpop.eup %725  ;;  %vm58_vm4 = vmor %vm56_vm0, %vm57_vm1  ;;  %v92_v39 = vadd.s32 56, %v843_v23  ;;  %v91_v40 = vadd.s32 48, %v843_v23  ;;  %v90_v41 = vadd.s32 40, %v843_v23  ;;  %v153_v42 = vcvt.s32.f32 %v854_v31 }
   0xf   :  { %v53_v6 = vsub.f32 1.0, %v52_v3  ;;  %v70_v8 = vmul.f32 %v726_v4, %v68_v1  ;;  %vm75_vm3 = vweird.f32 %v726_v4  ;;  %v152_v44 = vcvt.s32.f32 %v860_v32 }
  0x10   :  { %vm76_vm6 = vmor %vm74_vm2, %vm75_vm3  ;;  %v884_v45 = vsub.s32 %v846_v25, %v94_v33  ;;  %v151_v46 = vcvt.s32.f32 %v864_v34  ;;  %v150_v47 = vcvt.s32.f32 %v867_v35  ;;  %v149_v48 = vcvt.s32.f32 %v870_v36 }
  0x11   :  { %v54_v10 = vmul.f32 %v724_v2, %v53_v6  ;;  %v71_v11 = vsub.f32 1.0, %v70_v8  ;;  %v890_v49 = vsub.s32 %v846_v25, %v93_v37  ;;  %v148_v50 = vcvt.s32.f32 %v874_v38 }
  0x12   :  { %v894_v51 = vsub.s32 %v846_v25, %v92_v39  ;;  %v897_v52 = vsub.s32 %v846_v25, %v91_v40  ;;  %v900_v53 = vsub.s32 %v846_v25, %v90_v41  ;;  %v171_v54 = vsub.f32 %v153_v42, %v880_v43 }
  0x13   :  { %v55_v14 = vadd.f32 %v724_v2, %v54_v10  ;;  %v72_v15 = vmul.f32 %v726_v4, %v71_v11  ;;  %v170_v55 = vsub.f32 %v152_v44, %v880_v43  ;;  %v147_v56 = vcvt.s32.f32 %v884_v45 }
  0x14   :  { %v169_v57 = vsub.f32 %v151_v46, %v880_v43  ;;  %v168_v58 = vsub.f32 %v150_v47, %v880_v43  ;;  %v167_v59 = vsub.f32 %v149_v48, %v880_v43  ;;  %v146_v60 = vcvt.s32.f32 %v890_v49 }
  0x15   :  { %v59_v17 = vsel %vm58_vm4, %v724_v2, %v55_v14  ;;  %v73_v18 = vadd.f32 %v726_v4, %v72_v15  ;;  %v166_v61 = vsub.f32 %v148_v50, %v880_v43  ;;  %v145_v62 = vcvt.s32.f32 %v894_v51 }
  0x16   :  { %v64_v19 = vsel %vm61_vm5, %v63_v13, %v59_v17  ;;  %v144_v63 = vcvt.s32.f32 %v897_v52  ;;  %v89_v0 = vadd.s32 32, %v843_v23  ;;  %v143_v1 = vcvt.s32.f32 %v900_v53 }
  0x17   :  { %717 = vpush %v64_v19  ;;  %v77_v20 = vsel %vm76_vm6, %v726_v4, %v73_v18  ;;  %v88_v2 = vadd.s32 24, %v843_v23  ;;  %v915_v3 = vmul.f32 %v171_v54, %v171_v54  ;;  %v917_v4 = vmul.f32 %v170_v55, %v170_v55 }
  0x18   :  { %v82_v21 = vsel %vm79_vm7, %v81_v16, %v77_v20  ;;  %v165_v5 = vsub.f32 %v147_v56, %v880_v43  ;;  %v920_v6 = vmul.f32 %v169_v57, %v169_v57  ;;  %v922_v7 = vmul.f32 %v168_v58, %v168_v58 }
  0x19   :  { %719 = vpush %v82_v21  ;;  %v924_v8 = vmul.f32 %v167_v59, %v167_v59  ;;  %v164_v9 = vsub.f32 %v146_v60, %v880_v43  ;;  %v927_v10 = vmul.f32 %v166_v61, %v166_v61  ;;  %v163_v11 = vsub.f32 %v145_v62, %v880_v43 }
  0x1a   :  { %v162_v12 = vsub.f32 %v144_v63, %v880_v43  ;;  %v932_v13 = vsub.s32 %v846_v25, %v89_v0  ;;  %v161_v14 = vsub.f32 %v143_v1, %v880_v43  ;;  %v936_v15 = vsub.s32 %v846_v25, %v88_v2 }
  0x1b   :  { %v203_v16 = vsub.f32 0.0, %v915_v3  ;;  %v202_v17 = vsub.f32 0.0, %v917_v4  ;;  %v940_v18 = vmul.f32 %v165_v5, %v165_v5  ;;  %v201_v19 = vsub.f32 0.0, %v920_v6 }
  0x1c   :  { %v200_v20 = vsub.f32 0.0, %v922_v7  ;;  %v199_v21 = vsub.f32 0.0, %v924_v8  ;;  %v945_v22 = vmul.f32 %v164_v9, %v164_v9  ;;  %v198_v24 = vsub.f32 0.0, %v927_v10 }
  0x1d   :  { %v948_v26 = vmul.f32 %v163_v11, %v163_v11  ;;  %v950_v27 = vmul.f32 %v162_v12, %v162_v12  ;;  %v142_v28 = vcvt.s32.f32 %v932_v13  ;;  %v316_v29 = vsub.s32 0, %v854_v31 }
  0x1e   :  { %v954_v30 = vmul.f32 %v161_v14, %v161_v14  ;;  %v141_v33 = vcvt.s32.f32 %v936_v15  ;;  %v87_v37 = vadd.s32 16, %v843_v23  ;;  %vm315_vm8 = vcmp.lt.s32.totalorder %v854_v31, 0 }
  0x1f   :  { %v313_v39 = vsub.s32 0, %v860_v32  ;;  %v197_v40 = vsub.f32 0.0, %v940_v18  ;;  %v86_v41 = vadd.s32 8, %v843_v23  ;;  %vm312_vm9 = vcmp.lt.s32.totalorder %v860_v32, 0 }
  0x20   :  { %v196_v42 = vsub.f32 0.0, %v945_v22  ;;  %v965_v44 = vsub.s32 %v846_v25, %v87_v37  ;;  %v969_v46 = vsub.s32 %v846_v25, %v843_v23  ;;  %v195_v47 = vsub.f32 0.0, %v948_v26 }
  0x21   :  { %v194_v48 = vsub.f32 0.0, %v950_v27  ;;  %v160_v50 = vsub.f32 %v142_v28, %v880_v43  ;;  %v975_v54 = vsub.s32 %v846_v25, %v86_v41  ;;  %v978_v55 = vsel %vm315_vm8, %v316_v29, %v854_v31 }
  0x22   :  { %v310_v56 = vsub.s32 0, %v864_v34  ;;  %v193_v57 = vsub.f32 0.0, %v954_v30  ;;  %v159_v58 = vsub.f32 %v141_v33, %v880_v43  ;;  %v984_v23 = vsel %vm312_vm9, %v313_v39, %v860_v32 }
  0x23   :  { %vm309_vm10 = vcmp.lt.s32.totalorder %v864_v34, 0  ;;  %vm306_vm11 = vcmp.lt.s32.totalorder %v867_v35, 0  ;;  %v307_v59 = vsub.s32 0, %v867_v35  ;;  %v304_v25 = vsub.s32 0, %v870_v36 }
  0x24   :  { %v140_v31 = vcvt.s32.f32 %v965_v44  ;;  %v139_v60 = vcvt.s32.f32 %v975_v54  ;;  %v138_v61 = vcvt.s32.f32 %v969_v46  ;;  %vm303_vm12 = vcmp.lt.s32.totalorder %v870_v36, 0 }
  0x25   :  { %vm300_vm13 = vcmp.lt.s32.totalorder %v874_v38, 0  ;;  %v301_v32 = vsub.s32 0, %v874_v38  ;;  %v298_v62 = vsub.s32 0, %v884_v45  ;;  %vm297_vm14 = vcmp.lt.s32.totalorder %v884_v45, 0 }
  0x26   :  { %v295_v63 = vsub.s32 0, %v890_v49  ;;  %v176_v0 = vmul.f32 %v160_v50, %v160_v50  ;;  %v175_v1 = vmul.f32 %v159_v58, %v159_v58  ;;  %vm294_vm15 = vcmp.lt.s32.totalorder %v890_v49, 0 }
  0x27   :  { %vm291_vm0 = vcmp.lt.s32.totalorder %v894_v51, 0  ;;  %v292_v2 = vsub.s32 0, %v894_v51  ;;  %v289_v5 = vsub.s32 0, %v897_v52  ;;  %vm288_vm1 = vcmp.lt.s32.totalorder %v897_v52, 0 }
  0x28   :  { %v158_v9 = vsub.f32 %v140_v31, %v880_v43  ;;  %v157_v11 = vsub.f32 %v139_v60, %v880_v43  ;;  %v156_v12 = vsub.f32 %v138_v61, %v880_v43  ;;  %v1010_v14 = vsel %vm309_vm10, %v310_v56, %v864_v34 }
  0x29   :  { %v1015_v18 = vsel %vm306_vm11, %v307_v59, %v867_v35  ;;  %v1020_v28 = vsel %vm303_vm12, %v304_v25, %v870_v36  ;;  %v1025_v43 = vsel %vm300_vm13, %v301_v32, %v874_v38  ;;  %v1030_v34 = vsel %vm297_vm14, %v298_v62, %v884_v45 }
  0x2a   :  { %v1033_v29 = vsel %vm294_vm15, %v295_v63, %v890_v49  ;;  %v192_v35 = vsub.f32 0.0, %v176_v0  ;;  %v191_v33 = vsub.f32 0.0, %v175_v1  ;;  %v1038_v36 = vsel %vm291_vm0, %v292_v2, %v894_v51 }
  0x2b   :  { %v1041_v37 = vsel %vm288_vm1, %v289_v5, %v897_v52  ;;  %vm285_vm2 = vcmp.lt.s32.totalorder %v900_v53, 0  ;;  %v286_v38 = vsub.s32 0, %v900_v53  ;;  %v174_v45 = vmul.f32 %v158_v9, %v158_v9 }
  0x2c   :  { %v1047_v41 = vmul.f32 %v157_v11, %v157_v11  ;;  %v1049_v49 = vmul.f32 %v156_v12, %v156_v12  ;;  %vm333_vm3 = vcmp.le.s32.totalorder %v978_v55, 7  ;;  %vm332_vm4 = vcmp.le.s32.totalorder %v984_v23, 7 }
  0x2d   :  { %v1075_v7 = vsel %vm285_vm2, %v286_v38, %v900_v53  ;;  %vm282_vm5 = vcmp.lt.s32.totalorder %v932_v13, 0  ;;  %vm331_vm6 = vcmp.le.s32.totalorder %v1010_v14, 7  ;;  %vm330_vm7 = vcmp.le.s32.totalorder %v1015_v18, 7 }
  0x2e   :  { %v189_v53 = vsub.f32 0.0, %v1047_v41  ;;  %vm329_vm8 = vcmp.le.s32.totalorder %v1020_v28, 7  ;;  %vm328_vm9 = vcmp.le.s32.totalorder %v1025_v43, 7  ;;  %v280_v31 = vsub.s32 0, %v936_v15 }
  0x2f   :  { %vm327_vm10 = vcmp.le.s32.totalorder %v1030_v34, 7  ;;  %vm279_vm11 = vcmp.lt.s32.totalorder %v936_v15, 0  ;;  %v188_v61 = vsub.f32 0.0, %v1049_v49  ;;  %vm326_vm12 = vcmp.le.s32.totalorder %v1033_v29, 7 }
  0x30   :  { %v1114_v5 = vsel %vm279_vm11, %v280_v31, %v936_v15  ;;  %v277_v12 = vsub.s32 0, %v965_v44  ;;  %vm325_vm13 = vcmp.le.s32.totalorder %v1038_v36, 7  ;;  %vm324_vm14 = vcmp.le.s32.totalorder %v1041_v37, 7 }
  0x31   :  { %vm323_vm15 = vcmp.le.s32.totalorder %v1075_v7, 7  ;;  %vm276_vm1 = vcmp.lt.s32.totalorder %v965_v44, 0  ;;  %vm273_vm2 = vcmp.lt.s32.totalorder %v975_v54, 0 }
  0x48   :  { %s718_s1 = spop %717 }
  0x49   :  { %s66_s24 = smul.f32 0.5, %s718_s1 }
  0x4a   :  { %s720_s25 = spop %719 }
  0x4b   :  { %v1045_v39 = vstv %s66_s24 }
  0x4c   :  { %v220_v50 = vmul.f32 %v1045_v39, %v203_v16  ;;  %v219_v51 = vmul.f32 %v1045_v39, %v202_v17  ;;  %v218_v52 = vmul.f32 %v1045_v39, %v201_v19  ;;  %v217_v56 = vmul.f32 %v1045_v39, %v200_v20 }
  0x4d   :  { %v216_v58 = vmul.f32 %v1045_v39, %v199_v21  ;;  %v215_v3 = vmul.f32 %v1045_v39, %v198_v24  ;;  %v214_v4 = vmul.f32 %v1045_v39, %v197_v40  ;;  %v283_v16 = vsub.s32 0, %v932_v13 }
  0x4e   :  { %v251_v17 = vmul.f32 1.442695, %v220_v50  ;;  %v249_v6 = vmul.f32 1.442695, %v219_v51  ;;  %v247_v19 = vmul.f32 1.442695, %v218_v52  ;;  %v213_v10 = vmul.f32 %v1045_v39, %v196_v42 }
  0x4f   :  { %v245_v8 = vmul.f32 1.442695, %v217_v56  ;;  %v190_v20 = vsub.f32 0.0, %v174_v45  ;;  %v243_v21 = vmul.f32 1.442695, %v216_v58  ;;  %v212_v24 = vmul.f32 %v1045_v39, %v195_v47 }
  0x50   :  { %727 = vpow2.f32 %v251_v17  ;;  %v241_v22 = vmul.f32 1.442695, %v215_v3  ;;  %v239_v40 = vmul.f32 1.442695, %v214_v4  ;;  %v211_v42 = vmul.f32 %v1045_v39, %v194_v48 }
  0x51   :  { %729 = vpow2.f32 %v249_v6  ;;  %v210_v26 = vmul.f32 %v1045_v39, %v193_v57  ;;  %v209_v47 = vmul.f32 %v1045_v39, %v192_v35  ;;  %v208_v59 = vmul.f32 %v1045_v39, %v191_v33 }
  0x52   :  { %731 = vpow2.f32 %v247_v19  ;;  %v237_v25 = vmul.f32 1.442695, %v213_v10  ;;  %v207_v27 = vmul.f32 %v1045_v39, %v190_v20  ;;  %v1100_v48 = vstv %s720_s25 }
  0x53   :  { %733 = vpow2.f32 %v245_v8  ;;  %v235_v30 = vmul.f32 1.442695, %v212_v24  ;;  %v233_v57 = vmul.f32 1.442695, %v211_v42  ;;  %v1107_v60 = vsel %vm282_vm5, %v283_v16, %v932_v13 }
  0x54   :  { %735 = vpow2.f32 %v243_v21  ;;  %v231_v62 = vmul.f32 1.442695, %v210_v26  ;;  %v229_v63 = vmul.f32 1.442695, %v209_v47  ;;  %v1110_v0 = vmul.f32 1.442695, %v208_v59 }
  0x55   :  { %737 = vpow2.f32 %v241_v22  ;;  %v1116_v9 = vmul.f32 1.442695, %v207_v27  ;;  %v1122_v35 = vmul.f32 %v1045_v39, %v189_v53  ;;  %v274_v45 = vsub.s32 0, %v975_v54 }
  0x56   :  { %v728_v32 = vpop.eup %727  ;;  %739 = vpow2.f32 %v239_v40  ;;  %vm322_vm0 = vcmp.le.s32.totalorder %v1107_v60, 7  ;;  %v278_v60 = vsel %vm276_vm1, %v277_v12, %v965_v44 }
  0x57   :  { %v730_v1 = vpop.eup %729  ;;  %v269_v2 = vmul.f32 %v728_v32, %v1100_v48  ;;  %741 = vpow2.f32 %v237_v25  ;;  %v275_v44 = vsel %vm273_vm2, %v274_v45, %v975_v54  ;;  %vm320_vm5 = vcmp.le.s32.totalorder %v278_v60, 7 }
  0x58   :  { %v732_v11 = vpop.eup %731  ;;  %v268_v13 = vmul.f32 %v730_v1, %v1100_v48  ;;  %743 = vpow2.f32 %v235_v30 }
  0x59   :  { %v734_v33 = vpop.eup %733  ;;  %v349_v38 = vsel %vm333_vm3, %v269_v2, 0.0  ;;  %v267_v15 = vmul.f32 %v732_v11, %v1100_v48  ;;  %745 = vpow2.f32 %v233_v57  ;;  %vm270_vm3 = vcmp.lt.s32.totalorder %v969_v46, 0 }
  0x5a   :  { %v736_v41 = vpop.eup %735  ;;  %v1129_v50 = vand.u32 4294901760, %v349_v38  ;;  %v348_v51 = vsel %vm332_vm4, %v268_v13, 0.0  ;;  %v266_v52 = vmul.f32 %v734_v33, %v1100_v48  ;;  %747 = vpow2.f32 %v231_v62 }
  0x5b   :  { %v738_v56 = vpop.eup %737  ;;  %v1134_v58 = vand.u32 4294901760, %v348_v51  ;;  %v347_v55 = vsel %vm331_vm6, %v267_v15, 0.0  ;;  %v265_v3 = vmul.f32 %v736_v41, %v1100_v48  ;;  %749 = vpow2.f32 %v229_v63 }
  0x5c   :  { %v740_v4 = vpop.eup %739  ;;  %352 = vmatpush.msra.mxu0 %v1129_v50  ;;  %548 = vmatpush.msra.mxu3 %v1129_v50  ;;  %v1143_v23 = vsub.f32 %v349_v38, %v1129_v50  ;;  %v1145_v16 = vand.u32 4294901760, %v347_v55  ;;  %v346_v17 = vsel %vm330_vm7, %v266_v52, 0.0  ;;  %v264_v14 = vmul.f32 %v738_v56, %v1100_v48 }
  0x5d   :  { %v742_v6 = vpop.eup %741  ;;  %v1151_v19 = vsub.f32 %v348_v51, %v1134_v58  ;;  %v1153_v8 = vand.u32 4294901760, %v346_v17  ;;  %v345_v10 = vsel %vm329_vm8, %v265_v3, 0.0  ;;  %v263_v20 = vmul.f32 %v740_v4, %v1100_v48 }
  0x5e   :  { %v744_v21 = vpop.eup %743  ;;  %354 = vmatpush.msra.mxu0 %v1134_v58  ;;  %495 = vmatpush.msra.mxu2 %v1143_v23  ;;  %v1162_v18 = vsub.f32 %v347_v55, %v1145_v16  ;;  %v1164_v24 = vand.u32 4294901760, %v345_v10  ;;  %v394_v53 = vand.u32 4294901760, %v1143_v23  ;;  %v344_v28 = vsel %vm328_vm9, %v264_v14, 0.0 }
  0x5f   :  { %v746_v22 = vpop.eup %745  ;;  %550 = vmatpush.msra.mxu3 %v1134_v58  ;;  %v1171_v40 = vsub.f32 %v346_v17, %v1153_v8  ;;  %v1173_v42 = vand.u32 4294901760, %v344_v28  ;;  %v400_v26 = vand.u32 4294901760, %v1151_v19  ;;  %v343_v47 = vsel %vm327_vm10, %v263_v20, 0.0 }
  0x60   :  { %v748_v59 = vpop.eup %747  ;;  %356 = vmatpush.msra.mxu0 %v1145_v16  ;;  %498 = vmatpush.msra.mxu2 %v1151_v19  ;;  %v395_v43 = vsub.f32 %v1143_v23, %v394_v53  ;;  %v1185_v25 = vsub.f32 %v345_v10, %v1164_v24  ;;  %v1187_v31 = vand.u32 4294901760, %v343_v47  ;;  %v406_v27 = vand.u32 4294901760, %v1162_v18 }
  0x61   :  { %v750_v34 = vpop.eup %749  ;;  %552 = vmatpush.msra.mxu3 %v1145_v16  ;;  %v401_v30 = vsub.f32 %v1151_v19, %v400_v26  ;;  %v1196_v57 = vsub.f32 %v344_v28, %v1173_v42  ;;  %v262_v32 = vmul.f32 %v742_v6, %v1100_v48  ;;  %v412_v62 = vand.u32 4294901760, %v1171_v40 }
  0x62   :  { %358 = vmatpush.msra.mxu0 %v1153_v8  ;;  %501 = vmatpush.msra.mxu2 %v1162_v18  ;;  %v396_v63 = vand.u32 4294901760, %v395_v43  ;;  %v407_v1 = vsub.f32 %v1162_v18, %v406_v27  ;;  %v1206_v2 = vsub.f32 %v343_v47, %v1187_v31  ;;  %v261_v11 = vmul.f32 %v744_v21, %v1100_v48 }
  0x63   :  { %554 = vmatpush.msra.mxu3 %v1153_v8  ;;  %v342_v13 = vsel %vm326_vm12, %v262_v32, 0.0  ;;  %v413_v33 = vsub.f32 %v1171_v40, %v412_v62  ;;  %v418_v38 = vand.u32 4294901760, %v1185_v25  ;;  %v205_v15 = vmul.f32 %v1045_v39, %v188_v61 }
  0x64   :  { %360 = vmatpush.msra.mxu0 %v1164_v24  ;;  %397 = vmatpush.msra.mxu1 %v396_v63  ;;  %v402_v41 = vand.u32 4294901760, %v401_v30  ;;  %v1220_v51 = vand.u32 4294901760, %v342_v13  ;;  %v341_v29 = vsel %vm325_vm13, %v261_v11, 0.0  ;;  %v260_v52 = vmul.f32 %v746_v22, %v1100_v48 }
  0x65   :  { %504 = vmatpush.msra.mxu2 %v1171_v40  ;;  %556 = vmatpush.msra.mxu3 %v1164_v24  ;;  %v408_v56 = vand.u32 4294901760, %v407_v1  ;;  %v1227_v55 = vand.u32 4294901760, %v341_v29  ;;  %v419_v39 = vsub.f32 %v1185_v25, %v418_v38  ;;  %v424_v49 = vand.u32 4294901760, %v1196_v57 }
  0x66   :  { %362 = vmatpush.msra.mxu0 %v1173_v42  ;;  %403 = vmatpush.msra.mxu1 %v402_v41  ;;  %v1235_v36 = vsub.f32 %v342_v13, %v1220_v51  ;;  %v340_v61 = vsel %vm324_vm14, %v260_v52, 0.0  ;;  %v259_v3 = vmul.f32 %v748_v59, %v1100_v48  ;;  %v430_v4 = vand.u32 4294901760, %v1206_v2 }
  0x67   :  { %507 = vmatpush.msra.mxu2 %v1185_v25  ;;  %558 = vmatpush.msra.mxu3 %v1173_v42  ;;  %v414_v17 = vand.u32 4294901760, %v413_v33  ;;  %v1243_v14 = vand.u32 4294901760, %v340_v61  ;;  %v1246_v6 = vsub.f32 %v341_v29, %v1227_v55  ;;  %v223_v10 = vmul.f32 1.442695, %v1122_v35 }
  0x68   :  { %364 = vmatpush.msra.mxu0 %v1187_v31  ;;  %409 = vmatpush.msra.mxu1 %v408_v56  ;;  %v425_v37 = vsub.f32 %v1196_v57, %v424_v49  ;;  %v339_v20 = vsel %vm323_vm15, %v259_v3, 0.0  ;;  %v258_v21 = vmul.f32 %v750_v34, %v1100_v48  ;;  %v436_v28 = vand.u32 4294901760, %v1235_v36 }
  0x69   :  { %510 = vmatpush.msra.mxu2 %v1196_v57  ;;  %560 = vmatpush.msra.mxu3 %v1187_v31  ;;  %v1259_v22 = vand.u32 4294901760, %v339_v20  ;;  %v431_v35 = vsub.f32 %v1206_v2, %v430_v4  ;;  %v1265_v47 = vsub.f32 %v340_v61, %v1243_v14  ;;  %751 = vpow2.f32 %v1110_v0 }
  0x6a   :  { %366 = vmatpush.msra.mxu0 %v1220_v51  ;;  %415 = vmatpush.msra.mxu1 %v414_v17  ;;  %v420_v7 = vand.u32 4294901760, %v419_v39  ;;  %v338_v59 = vsel %vm322_vm0, %v258_v21, 0.0  ;;  %v442_v43 = vand.u32 4294901760, %v1246_v6  ;;  %753 = vpow2.f32 %v1116_v9 }
  0x6b   :  { %513 = vmatpush.msra.mxu2 %v1206_v2  ;;  %562 = vmatpush.msra.mxu3 %v1220_v51  ;;  %v1275_v34 = vand.u32 4294901760, %v338_v59  ;;  %v1278_v30 = vsub.f32 %v339_v20, %v1259_v22  ;;  %v426_v0 = vand.u32 4294901760, %v425_v37  ;;  %v437_v32 = vsub.f32 %v1235_v36, %v436_v28 }
  0x6c   :  { %368 = vmatpush.msra.mxu0 %v1227_v55  ;;  %421 = vmatpush.msra.mxu1 %v420_v7  ;;  %v448_v63 = vand.u32 4294901760, %v1265_v47  ;;  %755 = vpow2.f32 %v223_v10  ;;  %v432_v9 = vand.u32 4294901760, %v431_v35  ;;  %v221_v12 = vmul.f32 1.442695, %v205_v15  ;;  %v350_v35 = vld [vmem:[#allocation5] sm:$0xff] }
  0x6d   :  { %516 = vmatpush.msra.mxu2 %v1235_v36  ;;  %564 = vmatpush.msra.mxu3 %v1227_v55  ;;  %v1294_v1 = vsub.f32 %v338_v59, %v1275_v34  ;;  %v443_v11 = vsub.f32 %v1246_v6, %v442_v43  ;;  %v454_v13 = vand.u32 4294901760, %v1278_v30  ;;  %v271_v33 = vsub.s32 0, %v969_v46 }
  0x6e   :  { %370 = vmatpush.msra.mxu0 %v1243_v14  ;;  %427 = vmatpush.msra.mxu1 %v426_v0  ;;  %vm321_vm4 = vcmp.le.s32.totalorder %v1114_v5, 7  ;;  %757 = vpow2.f32 %v221_v12  ;;  %v438_v54 = vand.u32 4294901760, %v437_v32  ;;  %v449_v15 = vsub.f32 %v1265_v47, %v448_v63 }
  0x6f   :  { %v752_v41 = vpop.eup %751  ;;  %519 = vmatpush.msra.mxu2 %v1246_v6  ;;  %566 = vmatpush.msra.mxu3 %v1243_v14  ;;  %v460_v29 = vand.u32 4294901760, %v1294_v1  ;;  %vm319_vm6 = vcmp.le.s32.totalorder %v275_v44, 7  ;;  %v272_v56 = vsel %vm270_vm3, %v271_v33, %v969_v46  ;;  %v444_v3 = vand.u32 4294901760, %v443_v11 }
  0x70   :  { %372 = vmatpush.msra.mxu0 %v1259_v22  ;;  %433 = vmatpush.msra.mxu1 %v432_v9  ;;  %v257_v45 = vmul.f32 %v752_v41, %v1100_v48  ;;  %v754_v52 = vpop.eup %753  ;;  %v455_v10 = vsub.f32 %v1278_v30, %v454_v13  ;;  %v450_v21 = vand.u32 4294901760, %v449_v15  ;;  %vm318_vm7 = vcmp.le.s32.totalorder %v272_v56, 7 }
  0x71   :  { %522 = vmatpush.msra.mxu2 %v1265_v47  ;;  %568 = vmatpush.msra.mxu3 %v1259_v22  ;;  %v256_v17 = vmul.f32 %v754_v52, %v1100_v48  ;;  %v461_v5 = vsub.f32 %v1294_v1, %v460_v29  ;;  %v1345_v32 = vand.u32 4294901760, %v350_v35 }
  0x72   :  { %v756_v39 = vpop.eup %755  ;;  %374 = vmatpush.msra.mxu0 %v1275_v34  ;;  %439 = vmatpush.msra.mxu1 %v438_v54  ;;  %v337_v61 = vsel %vm321_vm4, %v257_v45, 0.0  ;;  %v456_v12 = vand.u32 4294901760, %v455_v10 }
  0x73   :  { %525 = vmatpush.msra.mxu2 %v1278_v30  ;;  %570 = vmatpush.msra.mxu3 %v1275_v34  ;;  %v1331_v37 = vand.u32 4294901760, %v337_v61  ;;  %v255_v46 = vmul.f32 %v756_v39, %v1100_v48  ;;  %v336_v20 = vsel %vm320_vm5, %v256_v17, 0.0  ;;  %v384_v44 = vsub.f32 %v350_v35, %v1345_v32 }
  0x74   :  { %445 = vmatpush.msra.mxu1 %v444_v3  ;;  %v758_v7 = vpop.eup %757  ;;  %v1339_v59 = vand.u32 4294901760, %v336_v20  ;;  %v462_v45 = vand.u32 4294901760, %v461_v5 }
  0x75   :  { %376 = vmatpush.msra.mxu0 %v1331_v37  ;;  %528 = vmatpush.msra.mxu2 %v1294_v1  ;;  %v1342_v60 = vsub.f32 %v337_v61, %v1331_v37  ;;  %v335_v0 = vsel %vm319_vm6, %v255_v46, 0.0  ;;  %v254_v11 = vmul.f32 %v758_v7, %v1100_v48  ;;  %v385_v61 = vand.u32 4294901760, %v384_v44 }
  0x76   :  { %572 = vmatpush.msra.mxu3 %v1331_v37  ;;  %451 = vmatpush.msra.mxu1 %v450_v21  ;;  %v1348_v9 = vand.u32 4294901760, %v335_v0  ;;  %v471_v33 = vsub.f32 %v336_v20, %v1339_v59 }
  0x77   :  { %378 = vmatpush.msra.mxu0 %v1339_v59  ;;  %531 = vmatpush.msra.mxu2 %v1342_v60  ;;  %v466_v41 = vand.u32 4294901760, %v1342_v60  ;;  %v334_v54 = vsel %vm318_vm7, %v254_v11, 0.0  ;;  %v386_v46 = vsub.f32 %v384_v44, %v385_v61 }
  0x78   :  { %574 = vmatpush.msra.mxu3 %v1339_v59  ;;  %457 = vmatpush.msra.mxu1 %v456_v12  ;;  %v477_v15 = vsub.f32 %v335_v0, %v1348_v9  ;;  %v381_v48 = vand.u32 4294901760, %v334_v54  ;;  %v472_v39 = vand.u32 4294901760, %v471_v33 }
  0x79   :  { %380 = vmatpush.msra.mxu0 %v1348_v9  ;;  %534 = vmatpush.msra.mxu2 %v471_v33  ;;  %v467_v52 = vsub.f32 %v1342_v60, %v466_v41  ;;  %v387_v35 = vand.u32 4294901760, %v386_v46 }
  0x7a   :  { %576 = vmatpush.msra.mxu3 %v1348_v9  ;;  %463 = vmatpush.msra.mxu1 %v462_v45  ;;  %v478_v3 = vand.u32 4294901760, %v477_v15  ;;  %v483_v56 = vsub.f32 %v334_v54, %v381_v48  ;;  %v473_v10 = vsub.f32 %v471_v33, %v472_v39 }
  0x7b   :  { %382 = vmatpush.msra.mxu0 %v381_v48  ;;  %537 = vmatpush.msra.mxu2 %v477_v15  ;;  %v468_v17 = vand.u32 4294901760, %v467_v52 }
  0x7c   :  { %578 = vmatpush.msra.mxu3 %v381_v48  ;;  %v479_v20 = vsub.f32 %v477_v15, %v478_v3  ;;  %v474_v21 = vand.u32 4294901760, %v473_v10  ;;  %v484_v5 = vand.u32 4294901760, %v483_v56  ;;  %388 = vmatmul.f32.vlgmr.msra.gmra.mxu0 %v387_v35 }
  0x7d   :  { %589 = vmatpush.msrb.mxu0 %v394_v53  ;;  %469 = vmatpush.msra.mxu1 %v468_v17 }
  0x7e   :  { %540 = vmatpush.msra.mxu2 %v483_v56  ;;  %v480_v7 = vand.u32 4294901760, %v479_v20  ;;  %v485_v60 = vsub.f32 %v483_v56, %v484_v5  ;;  %582 = vmatmul.f32.vlgmr.msra.gmra.mxu3 %v385_v61 }
  0x7f   :  { %593 = vmatpush.msrb.mxu0 %v400_v26  ;;  %543 = vmatmul.f32.vlgmr.msra.gmra.mxu2 %v384_v44 }
  0x80   :  { %475 = vmatpush.msra.mxu1 %v474_v21  ;;  %v486_v23 = vand.u32 4294901760, %v485_v60 }
  0x81   :  { %597 = vmatpush.msrb.mxu0 %v406_v27 }
  0x82   :  { %481 = vmatpush.msra.mxu1 %v480_v7 }
  0x83   :  { %601 = vmatpush.msrb.mxu0 %v412_v62 }
  0x84   :  { %487 = vmatpush.msra.mxu1 %v486_v23 }
  0x85   :  { %605 = vmatpush.msrb.mxu0 %v418_v38  ;;  %489 = vmatmul.f32.vlgmr.msra.gmra.mxu1 %v1345_v32 }
  0x86   :  { %656 = vmatpush.msrb.mxu1 %v1129_v50 }
  0x87   :  { %609 = vmatpush.msrb.mxu0 %v424_v49 }
  0x88   :  { %658 = vmatpush.msrb.mxu1 %v1134_v58 }
  0x89   :  { %613 = vmatpush.msrb.mxu0 %v430_v4 }
  0x8a   :  { %660 = vmatpush.msrb.mxu1 %v1145_v16 }
  0x8b   :  { %617 = vmatpush.msrb.mxu0 %v436_v28 }
  0x8c   :  { %662 = vmatpush.msrb.mxu1 %v1153_v8 }
  0x8d   :  { %621 = vmatpush.msrb.mxu0 %v442_v43 }
  0x8e   :  { %664 = vmatpush.msrb.mxu1 %v1164_v24 }
  0x8f   :  { %625 = vmatpush.msrb.mxu0 %v448_v63 }
  0x90   :  { %666 = vmatpush.msrb.mxu1 %v1173_v42 }
  0x91   :  { %629 = vmatpush.msrb.mxu0 %v454_v13 }
  0x92   :  { %668 = vmatpush.msrb.mxu1 %v1187_v31 }
  0x93   :  { %633 = vmatpush.msrb.mxu0 %v460_v29 }
  0x94   :  { %670 = vmatpush.msrb.mxu1 %v1220_v51 }
  0x95   :  { %637 = vmatpush.msrb.mxu0 %v466_v41 }
  0x96   :  { %672 = vmatpush.msrb.mxu1 %v1227_v55 }
  0x97   :  { %641 = vmatpush.msrb.mxu0 %v472_v39 }
  0x98   :  { %674 = vmatpush.msrb.mxu1 %v1243_v14 }
  0x99   :  { %645 = vmatpush.msrb.mxu0 %v478_v3 }
  0x9a   :  { %676 = vmatpush.msrb.mxu1 %v1259_v22 }
  0x9b   :  { %649 = vmatpush.msrb.mxu0 %v484_v5 }
  0x9c   :  { %678 = vmatpush.msrb.mxu1 %v1275_v34  ;;  %651 = vmatmul.f32.vlgmr.msrb.gmra.mxu0 %v1345_v32 }
  0x9e   :  { %680 = vmatpush.msrb.mxu1 %v1331_v37 }
  0xa0   :  { %682 = vmatpush.msrb.mxu1 %v1339_v59 }
  0xa2   :  { %684 = vmatpush.msrb.mxu1 %v1348_v9 }
  0xa4   :  { %686 = vmatpush.msrb.mxu1 %v381_v48 }
  0xa5   :  { %688 = vmatmul.f32.vlgmr.msrb.gmra.mxu1 %v1345_v32 }
  0xf9   :  { %v389_v58 = vpop.f32.mrf.mxu0 }
 0x101   :  { %v583_v18 = vpop.f32.mrf.mxu3 }
 0x102   :  { %v490_v50 = vpop.f32.mrf.mxu1  ;;  %v544_v19 = vpop.f32.mrf.mxu2 }
 0x103   :  { %v491_v16 = vadd.f32 %v490_v50, %v389_v58 }
 0x105   :  { %v545_v8 = vadd.f32 %v544_v19, %v491_v16 }
 0x107   :  { %v584_v24 = vadd.f32 %v583_v18, %v545_v8 }
 0x119   :  { %v652_v53 = vpop.f32.mrf.mxu0 }
 0x11a   :  { %v653_v40 = vadd.f32 %v652_v53, %v584_v24 }
 0x122   :  { %v689_v42 = vpop.f32.mrf.mxu1 }
 0x123   :  { %v690_v26 = vadd.f32 %v689_v42, %v653_v40 }
 0x125   :  { %699 = vst [vmem:[#allocation8] sm:$0xff] %v690_v26 }
 0x126   :  { %710 = dma.vmem_to_hbm [thread:$0]  %s706_s27, 128, %s708_s30, [#allocation7]  }
 0x127   :  { %809 = dma.done.wait [#allocation7], 128  }
 0x128   :  { %810 = vsyncadd [#allocation7], 4294967168 }
 0x129   :  { %715 = vsyncpa [#allocation6], 1 }
 0x12a   :  { %716 = vsyncpa [#allocation7], 1 }

</bundles_post_ra>
